<compile_context>
chip_gen: v7x
topology: tpu7x:2x2x1
jax: 0.10.0
libtpu: 0.0.40
codegen_flags: <defaults>
</compile_context>

<pallas_src>
import functools

import numpy as np

import jax
import jax.numpy as jnp
from jax import lax
from jax.experimental import pallas as pl
from jax.experimental.pallas import tpu as pltpu

LN_EPS = 1e-5


def _round_up(a, b):
    return (a + b - 1) // b * b


def _cdiv(a, b):
    return (a + b - 1) // b


def _layernorm_cols(h, gamma, beta):
    # LayerNorm over the feature axis, which is axis 0 in transposed space.
    mean = jnp.mean(h, axis=0, keepdims=True)
    var = jnp.mean((h - mean) ** 2, axis=0, keepdims=True)
    return (h - mean) * lax.rsqrt(var + LN_EPS) * gamma + beta


def _layernorm_rows(h, gamma, beta):
    mean = jnp.mean(h, axis=-1, keepdims=True)
    var = jnp.mean((h - mean) ** 2, axis=-1, keepdims=True)
    return (h - mean) * lax.rsqrt(var + LN_EPS) * gamma + beta


# ---------------------------------------------------------------------------
# Pass 1: per-node MLP in transposed space.
#   hT = ReLU(LN(W2T @ ReLU(LN(W1T @ xT)))), tiled over node-column blocks.
# ---------------------------------------------------------------------------
def mlp_kernel(xt_ref, w1t_ref, w2t_ref, p_ref, ht_ref, *, n_valid):
    xt = xt_ref[...]                       # (f_pad, bn) f32
    p = p_ref[...]                         # (H, 8): b1,g1,be1,b2,g2,be2,0,0 cols
    b1, g1, be1 = p[:, 0:1], p[:, 1:2], p[:, 2:3]
    b2, g2, be2 = p[:, 3:4], p[:, 4:5], p[:, 5:6]

    h = jnp.dot(w1t_ref[...], xt, preferred_element_type=jnp.float32) + b1
    h = _layernorm_cols(h, g1, be1)
    h = jnp.maximum(h, 0.0)

    h = jnp.dot(w2t_ref[...], h, preferred_element_type=jnp.float32) + b2
    h = _layernorm_cols(h, g2, be2)
    h = jnp.maximum(h, 0.0)

    # Zero-mask padded node columns so downstream paths never see LN(bias)
    # garbage from the zero-padded inputs.
    bn = ht_ref.shape[1]
    col = pl.program_id(0) * bn + lax.broadcasted_iota(jnp.int32, h.shape, 1)
    ht_ref[...] = jnp.where(col < n_valid, h, 0.0)


def node_mlp_transposed(x, params, n, n_pad, bn):
    f_in = x.shape[1]
    hidden = params["w2"].shape[1]
    f_pad = _round_up(f_in, 8)

    xT = jnp.zeros((f_pad, n_pad), jnp.float32).at[:f_in, :n].set(x.T)
    w1T = jnp.zeros((hidden, f_pad), jnp.float32).at[:, :f_in].set(params["w1"].T)
    w2T = params["w2"].T
    # Pack the six tiny (H, 1) vectors into a single (H, 8) block.
    packed = jnp.concatenate(
        [params["b1"].T, params["g1"].T, params["be1"].T,
         params["b2"].T, params["g2"].T, params["be2"].T,
         jnp.zeros((hidden, 2), jnp.float32)], axis=1)

    return pl.pallas_call(
        functools.partial(mlp_kernel, n_valid=n),
        out_shape=jax.ShapeDtypeStruct((hidden, n_pad), jnp.float32),
        grid=(n_pad // bn,),
        in_specs=[
            pl.BlockSpec((f_pad, bn), lambda i: (0, i)),
            pl.BlockSpec((hidden, f_pad), lambda i: (0, 0)),
            pl.BlockSpec((hidden, hidden), lambda i: (0, 0)),
            pl.BlockSpec((hidden, 8), lambda i: (0, 0)),
        ],
        out_specs=pl.BlockSpec((hidden, bn), lambda i: (0, i)),
        compiler_params=pltpu.CompilerParams(
            dimension_semantics=("parallel",)),
    )(xT, w1T, w2T, packed)


# ---------------------------------------------------------------------------
# Pass 2a (sparse, default): CSR-style chunked edge aggregation.
#   grid = (num_chunks,); chunks are sorted by destination tile; the output
#   block (H, bn) stays VMEM-resident while consecutive chunks hit the same
#   tile; first chunk of a tile initializes it with the residual h tile.
# ---------------------------------------------------------------------------
def aggr_sparse_kernel(tile_ref, first_ref, rows_ref, hg_ref, hres_ref, o_ref):
    c = pl.program_id(0)

    @pl.when(first_ref[c] == 1)
    def _init():
        o_ref[...] = hres_ref[...]          # residual: out = h + aggr

    rl = rows_ref[...]                      # (C, 1) int32 local dest rows, -1 = pad
    chunk, tn = rl.shape[0], o_ref.shape[1]
    onehot = (rl == lax.broadcasted_iota(jnp.int32, (chunk, tn), 1)
              ).astype(jnp.float32)         # (C, tn) scatter matrix
    o_ref[...] += jnp.dot(hg_ref[...], onehot,
                          preferred_element_type=jnp.float32)


def _chunk_edges_by_dest_tile(row, col, n_pad, bn, chunk):
    """Host-side, one-time graph preprocessing: edges sorted by destination
    tile and padded to whole chunks (>= 1 chunk per tile; sentinel slots use
    local_row=-1 / col=0, which contribute nothing)."""
    row = np.asarray(row).astype(np.int64)
    col = np.asarray(col).astype(np.int64)
    num_tiles = n_pad // bn
    order = np.argsort(row, kind="stable")
    row_s, col_s = row[order], col[order]
    tile_id = row_s // bn
    counts = np.bincount(tile_id, minlength=num_tiles).astype(np.int64)
    chunks_per_tile = np.maximum(1, -(-counts // chunk))
    nchunks = int(chunks_per_tile.sum())

    tile_of_chunk = np.repeat(np.arange(num_tiles), chunks_per_tile).astype(np.int32)
    first_flag = np.zeros(nchunks, np.int32)
    first_flag[np.cumsum(chunks_per_tile) - chunks_per_tile] = 1

    local_rows = np.full(nchunks * chunk, -1, np.int32)
    gather_cols = np.zeros(nchunks * chunk, np.int32)
    chunk_start = np.cumsum(chunks_per_tile) - chunks_per_tile
    edge_start = np.cumsum(counts) - counts
    pos = np.arange(row_s.shape[0]) - edge_start[tile_id]
    slot = chunk_start[tile_id] * chunk + pos
    local_rows[slot] = (row_s - tile_id * bn).astype(np.int32)
    gather_cols[slot] = col_s.astype(np.int32)
    return tile_of_chunk, first_flag, local_rows.reshape(-1, 1), gather_cols


def aggregate_sparse(hT, row, col, n, n_pad, bn, chunk):
    hidden = hT.shape[0]
    tile_of_chunk, first_flag, local_rows, gather_cols = _chunk_edges_by_dest_tile(
        row, col, n_pad, bn, chunk)
    nchunks = int(tile_of_chunk.shape[0])

    # E-scaled gather of the source rows of h (wrapper-side XLA take).
    hg = jnp.take(hT, jnp.asarray(gather_cols), axis=1)     # (H, nchunks*chunk)

    grid_spec = pltpu.PrefetchScalarGridSpec(
        num_scalar_prefetch=2,
        grid=(nchunks,),
        in_specs=[
            pl.BlockSpec((chunk, 1), lambda c, t, f: (c, 0)),       # local rows
            pl.BlockSpec((hidden, chunk), lambda c, t, f: (0, c)),  # gathered h
            pl.BlockSpec((hidden, bn), lambda c, t, f: (0, t[c])),  # residual h
        ],
        out_specs=pl.BlockSpec((hidden, bn), lambda c, t, f: (0, t[c])),
    )
    return pl.pallas_call(
        aggr_sparse_kernel,
        out_shape=jax.ShapeDtypeStruct((hidden, n_pad), jnp.float32),
        grid_spec=grid_spec,
        compiler_params=pltpu.CompilerParams(
            dimension_semantics=("arbitrary",)),
    )(jnp.asarray(tile_of_chunk), jnp.asarray(first_flag),
      jnp.asarray(local_rows), hg, hT)


# ---------------------------------------------------------------------------
# Pass 2b (dense graphs): outT = hT @ A'^T, A' = A + I streamed as int8.
# ---------------------------------------------------------------------------
def aggr_dense_kernel(h_ref, adj_ref, o_ref):
    @pl.when(pl.program_id(1) == 0)
    def _init():
        o_ref[...] = jnp.zeros_like(o_ref)

    # int8 adjacency stream widened on the VPU (hidden under the DMA); works on
    # v5e/v6e/v7x.  TODO(synk): on v7x an fp8(e4m3) A' could feed the MXU
    # directly (exact only for multiplicity + 1 <= 16).
    a = adj_ref[...].astype(jnp.float32)
    o_ref[...] += jnp.dot(h_ref[...], a, preferred_element_type=jnp.float32)


def aggregate_dense(hT, row, col, n, n_pad, bn):
    hidden = hT.shape[0]

    # Exactness guard for the int8 adjacency stream (overflow is silent).
    if int(row.shape[0]) > 0:
        keys = (np.asarray(row).astype(np.int64) * n_pad
                + np.asarray(col).astype(np.int64))
        _, counts = np.unique(keys, return_counts=True)
        max_mult = int(counts.max())
    else:
        max_mult = 0
    assert max_mult + 1 <= 127, (
        f"edge multiplicity {max_mult} too large for the int8 adjacency path")

    # A'^T built directly in int8 with a single fused scatter (residual folded
    # into the diagonal); no f32/int32 N^2 temporaries.
    diag = jnp.arange(n_pad, dtype=jnp.int32)
    src = jnp.concatenate([jnp.asarray(col, jnp.int32), diag])
    dst = jnp.concatenate([jnp.asarray(row, jnp.int32), diag])
    adjT = jnp.zeros((n_pad, n_pad), jnp.int8).at[src, dst].add(
        jnp.ones(src.shape, jnp.int8))

    return pl.pallas_call(
        aggr_dense_kernel,
        out_shape=jax.ShapeDtypeStruct((hidden, n_pad), jnp.float32),
        grid=(n_pad // bn, n_pad // bn),        # (dest tile j, source tile k)
        in_specs=[
            pl.BlockSpec((hidden, bn), lambda j, k: (0, k)),   # hT source tile
            pl.BlockSpec((bn, bn), lambda j, k: (k, j)),       # A'^T block (int8)
        ],
        out_specs=pl.BlockSpec((hidden, bn), lambda j, k: (0, j)),
        compiler_params=pltpu.CompilerParams(
            dimension_semantics=("parallel", "arbitrary")),
    )(hT, adjT)


# ---------------------------------------------------------------------------
# Top-level wrapper.
# ---------------------------------------------------------------------------
def custom_gcn(x, edge_index, params, *, method="auto", block=None, chunk=256):
    """x: (N, input_dim) f32, edge_index: (2, E) int32.

    Note: not jit-able end-to-end — the sparse path builds its CSR chunk
    tables on the host (standard one-time graph preprocessing)."""
    n = x.shape[0]
    row, col = edge_index[0], edge_index[1]
    e = int(row.shape[0])

    # One node-tile size everywhere: multiple of 128, capped at 2048 (keeps
    # double-buffered int8 A' tiles ~8 MiB, safe for v7x's 64 MiB VMEM), and
    # sized so the "parallel" axis gets >= 2 tiles when the graph allows it
    # (v7x has 2 TensorCores).
    if block is None:
        bn = min(2048, max(128, _round_up(_cdiv(n, 2), 128)))
    else:
        bn = max(128, _round_up(block, 128))
    n_pad = _round_up(n, bn)
    chunk = max(128, _round_up(chunk, 128))

    hT = node_mlp_transposed(x, params, n, n_pad, bn)     # (H, n_pad), lane-dense

    if method == "auto":
        density = e / float(max(n, 1)) ** 2
        method = "dense" if density >= 0.05 else "sparse"

    if method == "dense":
        outT = aggregate_dense(hT, row, col, n, n_pad, bn)
    else:
        outT = aggregate_sparse(hT, row, col, n, n_pad, bn, chunk)

    return outT[:, :n].T                                   # (n, hidden)


def init_params(key, input_dim=6, hidden_dim=32):
    k1, k2, k3, k4 = jax.random.split(key, 4)
    s1 = 1.0 / jnp.sqrt(input_dim)
    s2 = 1.0 / jnp.sqrt(hidden_dim)
    return {
        # Linear stored as (in, out) so the math is x @ W (+ b).
        "w1": jax.random.uniform(k1, (input_dim, hidden_dim), jnp.float32, -s1, s1),
        "b1": jax.random.uniform(k2, (1, hidden_dim), jnp.float32, -s1, s1),
        "g1": jnp.ones((1, hidden_dim), jnp.float32),
        "be1": jnp.zeros((1, hidden_dim), jnp.float32),
        "w2": jax.random.uniform(k3, (hidden_dim, hidden_dim), jnp.float32, -s2, s2),
        "b2": jax.random.uniform(k4, (1, hidden_dim), jnp.float32, -s2, s2),
        "g2": jnp.ones((1, hidden_dim), jnp.float32),
        "be2": jnp.zeros((1, hidden_dim), jnp.float32),
    }


def reference(x, edge_index, p):
    """Pure-JAX reference matching the PyTorch forward exactly."""
    hp = jax.lax.Precision.HIGHEST
    h = jnp.dot(x, p["w1"], precision=hp) + p["b1"]
    h = _layernorm_rows(h, p["g1"], p["be1"])
    h = jnp.maximum(h, 0.0)
    h = jnp.dot(h, p["w2"], precision=hp) + p["b2"]
    h = _layernorm_rows(h, p["g2"], p["be2"])
    h = jnp.maximum(h, 0.0)
    row, col = edge_index[0], edge_index[1]
    aggr = jnp.zeros_like(h).at[row].add(h[col])
    return h + aggr


if __name__ == "__main__":
    N, E, INPUT_DIM, HIDDEN = 300, 900, 6, 32
    key = jax.random.PRNGKey(0)
    kx, ke, kp = jax.random.split(key, 3)

    x = jax.random.normal(kx, (N, INPUT_DIM), jnp.float32)
    edge_index = jax.random.randint(ke, (2, E), 0, N, jnp.int32)
    params = init_params(kp, INPUT_DIM, HIDDEN)

    ref = reference(x, edge_index, params)

    # Exercise both aggregation paths (the demo graph is ~1% dense, so "auto"
    # would take the sparse CSR/one-hot path; the dense int8 path is the
    # fallback for genuinely dense graphs).
    out_sparse = jax.block_until_ready(
        custom_gcn(x, edge_index, params, method="sparse"))
    out_dense = jax.block_until_ready(
        custom_gcn(x, edge_index, params, method="dense"))

    assert out_sparse.shape == (N, HIDDEN)
    assert out_dense.shape == (N, HIDDEN)
    err_s = float(jnp.max(jnp.abs(out_sparse - ref)))
    err_d = float(jnp.max(jnp.abs(out_dense - ref)))
    assert err_s < 2e-3, f"sparse path max abs err {err_s}"
    assert err_d < 2e-3, f"dense path max abs err {err_d}"
    print("KERNEL_OK")
</pallas_src>

<mosaic_0001>
module attributes {stable_mosaic.version = 11 : i64} {
  func.func @mlp_kernel(%arg0: i32, %arg1: memref<8x256xf32, #tpu.memory_space<vmem>>, %arg2: memref<32x8xf32, #tpu.memory_space<vmem>>, %arg3: memref<32x32xf32, #tpu.memory_space<vmem>>, %arg4: memref<32x8xf32, #tpu.memory_space<vmem>>, %arg5: memref<32x256xf32, #tpu.memory_space<vmem>>) attributes {dimension_semantics = [#tpu.dimension_semantics<parallel>], iteration_bounds = array<i64: 2>, scalar_prefetch = 0 : i64, scratch_operands = 0 : i64, tpu.core_type = #tpu.core_type<tc>, window_params = [{transform_indices = @transform_0, window_bounds = array<i64: 8, 256>}, {pipeline_mode = #tpu.pipeline_mode<synchronous>, transform_indices = @transform_1, window_bounds = array<i64: 32, 8>}, {pipeline_mode = #tpu.pipeline_mode<synchronous>, transform_indices = @transform_2, window_bounds = array<i64: 32, 32>}, {pipeline_mode = #tpu.pipeline_mode<synchronous>, transform_indices = @transform_3, window_bounds = array<i64: 32, 8>}, {transform_indices = @transform_4, window_bounds = array<i64: 32, 256>}]} {
    %c0 = arith.constant 0 : index
    %c0_0 = arith.constant 0 : index
    %0 = vector.load %arg1[%c0, %c0_0] : memref<8x256xf32, #tpu.memory_space<vmem>>, vector<8x256xf32>
    %c0_1 = arith.constant 0 : index
    %c0_2 = arith.constant 0 : index
    %1 = vector.load %arg4[%c0_1, %c0_2] : memref<32x8xf32, #tpu.memory_space<vmem>>, vector<32x8xf32>
    %2 = vector.extract_strided_slice %1 {offsets = [0, 0], sizes = [32, 1], strides = [1, 1]} : vector<32x8xf32> to vector<32x1xf32>
    %3 = vector.extract_strided_slice %1 {offsets = [0, 1], sizes = [32, 1], strides = [1, 1]} : vector<32x8xf32> to vector<32x1xf32>
    %4 = vector.extract_strided_slice %1 {offsets = [0, 2], sizes = [32, 1], strides = [1, 1]} : vector<32x8xf32> to vector<32x1xf32>
    %5 = vector.extract_strided_slice %1 {offsets = [0, 3], sizes = [32, 1], strides = [1, 1]} : vector<32x8xf32> to vector<32x1xf32>
    %6 = vector.extract_strided_slice %1 {offsets = [0, 4], sizes = [32, 1], strides = [1, 1]} : vector<32x8xf32> to vector<32x1xf32>
    %7 = vector.extract_strided_slice %1 {offsets = [0, 5], sizes = [32, 1], strides = [1, 1]} : vector<32x8xf32> to vector<32x1xf32>
    %c0_3 = arith.constant 0 : index
    %c0_4 = arith.constant 0 : index
    %8 = vector.load %arg2[%c0_3, %c0_4] : memref<32x8xf32, #tpu.memory_space<vmem>>, vector<32x8xf32>
    %cst = arith.constant dense<0.000000e+00> : vector<32x256xf32>
    %9 = tpu.matmul %8, %0, %cst {dimension_numbers = #tpu.dot_dimension_numbers<[1], [0], [0], [1], [0, 0, 1, 1], [], []>} : vector<32x8xf32>, vector<8x256xf32>, vector<32x256xf32> -> vector<32x256xf32>
    %10 = vector.broadcast %2 : vector<32x1xf32> to vector<32x256xf32>
    %11 = arith.addf %9, %10 : vector<32x256xf32>
    %cst_5 = arith.constant dense<0.000000e+00> : vector<256xf32>
    %12 = vector.multi_reduction <add>, %11, %cst_5 [0] : vector<32x256xf32> to vector<256xf32>
    %13 = vector.shape_cast %12 : vector<256xf32> to vector<1x256xf32>
    %cst_6 = arith.constant 3.200000e+01 : f32
    %14 = vector.broadcast %cst_6 : f32 to vector<1x256xf32>
    %15 = arith.divf %13, %14 : vector<1x256xf32>
    %16 = vector.broadcast %15 : vector<1x256xf32> to vector<32x256xf32>
    %17 = arith.subf %11, %16 : vector<32x256xf32>
    %18 = arith.mulf %17, %17 : vector<32x256xf32>
    %cst_7 = arith.constant dense<0.000000e+00> : vector<256xf32>
    %19 = vector.multi_reduction <add>, %18, %cst_7 [0] : vector<32x256xf32> to vector<256xf32>
    %20 = vector.shape_cast %19 : vector<256xf32> to vector<1x256xf32>
    %cst_8 = arith.constant 3.200000e+01 : f32
    %21 = vector.broadcast %cst_8 : f32 to vector<1x256xf32>
    %22 = arith.divf %20, %21 : vector<1x256xf32>
    %23 = vector.broadcast %15 : vector<1x256xf32> to vector<32x256xf32>
    %24 = arith.subf %11, %23 : vector<32x256xf32>
    %cst_9 = arith.constant 9.99999974E-6 : f32
    %25 = vector.broadcast %cst_9 : f32 to vector<1x256xf32>
    %26 = arith.addf %22, %25 : vector<1x256xf32>
    %27 = math.rsqrt %26 : vector<1x256xf32>
    %28 = vector.broadcast %27 : vector<1x256xf32> to vector<32x256xf32>
    %29 = arith.mulf %24, %28 : vector<32x256xf32>
    %30 = vector.broadcast %3 : vector<32x1xf32> to vector<32x256xf32>
    %31 = arith.mulf %29, %30 : vector<32x256xf32>
    %32 = vector.broadcast %4 : vector<32x1xf32> to vector<32x256xf32>
    %33 = arith.addf %31, %32 : vector<32x256xf32>
    %cst_10 = arith.constant 0.000000e+00 : f32
    %34 = vector.broadcast %cst_10 : f32 to vector<32x256xf32>
    %35 = arith.maximumf %33, %34 : vector<32x256xf32>
    %c0_11 = arith.constant 0 : index
    %c0_12 = arith.constant 0 : index
    %36 = vector.load %arg3[%c0_11, %c0_12] : memref<32x32xf32, #tpu.memory_space<vmem>>, vector<32x32xf32>
    %cst_13 = arith.constant dense<0.000000e+00> : vector<32x256xf32>
    %37 = tpu.matmul %36, %35, %cst_13 {dimension_numbers = #tpu.dot_dimension_numbers<[1], [0], [0], [1], [0, 0, 1, 1], [], []>} : vector<32x32xf32>, vector<32x256xf32>, vector<32x256xf32> -> vector<32x256xf32>
    %38 = vector.broadcast %5 : vector<32x1xf32> to vector<32x256xf32>
    %39 = arith.addf %37, %38 : vector<32x256xf32>
    %cst_14 = arith.constant dense<0.000000e+00> : vector<256xf32>
    %40 = vector.multi_reduction <add>, %39, %cst_14 [0] : vector<32x256xf32> to vector<256xf32>
    %41 = vector.shape_cast %40 : vector<256xf32> to vector<1x256xf32>
    %cst_15 = arith.constant 3.200000e+01 : f32
    %42 = vector.broadcast %cst_15 : f32 to vector<1x256xf32>
    %43 = arith.divf %41, %42 : vector<1x256xf32>
    %44 = vector.broadcast %43 : vector<1x256xf32> to vector<32x256xf32>
    %45 = arith.subf %39, %44 : vector<32x256xf32>
    %46 = arith.mulf %45, %45 : vector<32x256xf32>
    %cst_16 = arith.constant dense<0.000000e+00> : vector<256xf32>
    %47 = vector.multi_reduction <add>, %46, %cst_16 [0] : vector<32x256xf32> to vector<256xf32>
    %48 = vector.shape_cast %47 : vector<256xf32> to vector<1x256xf32>
    %cst_17 = arith.constant 3.200000e+01 : f32
    %49 = vector.broadcast %cst_17 : f32 to vector<1x256xf32>
    %50 = arith.divf %48, %49 : vector<1x256xf32>
    %51 = vector.broadcast %43 : vector<1x256xf32> to vector<32x256xf32>
    %52 = arith.subf %39, %51 : vector<32x256xf32>
    %cst_18 = arith.constant 9.99999974E-6 : f32
    %53 = vector.broadcast %cst_18 : f32 to vector<1x256xf32>
    %54 = arith.addf %50, %53 : vector<1x256xf32>
    %55 = math.rsqrt %54 : vector<1x256xf32>
    %56 = vector.broadcast %55 : vector<1x256xf32> to vector<32x256xf32>
    %57 = arith.mulf %52, %56 : vector<32x256xf32>
    %58 = vector.broadcast %6 : vector<32x1xf32> to vector<32x256xf32>
    %59 = arith.mulf %57, %58 : vector<32x256xf32>
    %60 = vector.broadcast %7 : vector<32x1xf32> to vector<32x256xf32>
    %61 = arith.addf %59, %60 : vector<32x256xf32>
    %cst_19 = arith.constant 0.000000e+00 : f32
    %62 = vector.broadcast %cst_19 : f32 to vector<32x256xf32>
    %63 = arith.maximumf %61, %62 : vector<32x256xf32>
    %c256_i32 = arith.constant 256 : i32
    %64 = arith.muli %arg0, %c256_i32 : i32
    %65 = tpu.iota {dimensions = array<i32: 1>} : vector<32x256xi32>
    %66 = vector.broadcast %64 : i32 to vector<32x256xi32>
    %67 = arith.addi %66, %65 : vector<32x256xi32>
    %c300_i32 = arith.constant 300 : i32
    %68 = vector.broadcast %c300_i32 : i32 to vector<32x256xi32>
    %69 = arith.cmpi slt, %67, %68 : vector<32x256xi32>
    %cst_20 = arith.constant 0.000000e+00 : f32
    %70 = vector.broadcast %cst_20 : f32 to vector<32x256xf32>
    %71 = arith.select %69, %63, %70 : vector<32x256xi1>, vector<32x256xf32>
    %c0_21 = arith.constant 0 : index
    %c0_22 = arith.constant 0 : index
    %72 = vector.load %arg5[%c0_21, %c0_22] : memref<32x256xf32, #tpu.memory_space<vmem>>, vector<32x256xf32>
    tpu.vector_store %arg5[%c0_21, %c0_22], %71 {strides = array<i32>} : memref<32x256xf32, #tpu.memory_space<vmem>>, vector<32x256xf32>,
    return
  }
  func.func @transform_0(%arg0: i32) -> (i32, i32) {
    %c0_i32 = arith.constant 0 : i32
    %c0_i32_0 = arith.constant 0 : i32
    return %c0_i32, %arg0 : i32, i32
  }
  func.func @transform_1(%arg0: i32) -> (i32, i32) {
    %c0_i32 = arith.constant 0 : i32
    %c0_i32_0 = arith.constant 0 : i32
    %c0_i32_1 = arith.constant 0 : i32
    return %c0_i32, %c0_i32_0 : i32, i32
  }
  func.func @transform_2(%arg0: i32) -> (i32, i32) {
    %c0_i32 = arith.constant 0 : i32
    %c0_i32_0 = arith.constant 0 : i32
    %c0_i32_1 = arith.constant 0 : i32
    return %c0_i32, %c0_i32_0 : i32, i32
  }
  func.func @transform_3(%arg0: i32) -> (i32, i32) {
    %c0_i32 = arith.constant 0 : i32
    %c0_i32_0 = arith.constant 0 : i32
    %c0_i32_1 = arith.constant 0 : i32
    return %c0_i32, %c0_i32_0 : i32, i32
  }
  func.func @transform_4(%arg0: i32) -> (i32, i32) {
    %c0_i32 = arith.constant 0 : i32
    %c0_i32_0 = arith.constant 0 : i32
    return %c0_i32, %arg0 : i32, i32
  }
}

</mosaic_0001>

<bundles_post_ra>
// kernel: tpu_custom_call.1
= control target key start
LH: loop header
LB: loop body
LE: loop exit
PB: predicated region body
PF: predicated region fallthrough
CT: control target
= control target key end

     0   :  { %9 = vsyncpa [#allocation3], 0  ;;  %s1181_s0 = inlined_call_operand.vmem [shape: f32[8,512], index: 0, kind: input, shape index: {}]   ;;  %s1182_s1 = inlined_call_operand.vmem [shape: f32[32,8], index: 1, kind: input, shape index: {}]   ;;  %s1183_s2 = inlined_call_operand.vmem [shape: f32[32,32], index: 2, kind: input, shape index: {}]   ;;  %s1184_s3 = inlined_call_operand.vmem [shape: f32[32,8], index: 3, kind: input, shape index: {}]   ;;  %s1185_s4 = inlined_call_operand.hbm [shape: f32[32,512], index: 4, kind: output, shape index: {}]  }
   0x1   :  { %11 = vsyncpa [#allocation3 + $0x1], 0  ;;  %s1004_s15 = smov 0   ;;  %s1006_s16 = smov 0  }
   0x2   :  { %s1008_s17 = smov 0   ;;  %s1010_s18 = smov 0  }
   0x3 LB: > { %s1025_s19 = sadd.s32 4294967295, %s966_s18   ;;  %s803_s20 = sadd.s32 4294967294, %s966_s18   ;;  %s966_s18 = sphi %s1010_s18, %s1191_s18   ;;  %s962_s17 = sphi %s1008_s17, %s1190_s17   ;;  %s958_s16 = sphi %s1006_s16, %s1189_s16   ;;  %s954_s15 = sphi %s1004_s15, %s1188_s15  }
   0x4   : > { %s1029_s21 = sadd.s32 1, %s966_s18   ;;  %s113_s22 = sadd.s32 1, %s962_s17 }
   0x5   : > { %s110_s23 = ssub.s32 %s966_s18, %s1029_s21  ;;  %p123_p0 = scmp.ne.s32.totalorder %s962_s17, %s958_s16 }
   0x6   : > { %p111_p1 = scmp.eq.s32.totalorder %s110_s23, 0  ;;  %p124_p2 = scmp.eq.s32.totalorder %s1025_s19, 1 }
   0x7   : > { %p129_p3 = scmp.ne.s32.totalorder %s958_s16, %s954_s15  ;;  %p130_p4 = scmp.eq.s32.totalorder %s803_s20, 1 }
   0x8   : > { %s1040_s24 = scalar_select %p111_p1, %s962_s17, %s113_s22  }
   0x9   : > { %p1042_p5 = por %p124_p2, %p123_p0  ;;  %p1046_p6 = por %p130_p4, %p129_p3 }
   0xa   : > { %p806_p7 = scmp.ge.s32.totalorder %s966_s18, 1  ;;  %p166_p8 = scmp.lt.s32.totalorder %s966_s18, 3 }
   0xc   : > { %p167_p9 = pnand %p806_p7, %p166_p8 }
   0xd   : > { %s808_s27 = sshll.u32 (!%p167_p9), %s1025_s19, 1  ;;  %v968_v0 = vmov (!%p167_p9), 0.0   ;;  %v201_v1 = vld [vmem:[%s1184_s3] sm:$0xff] (!%p167_p9)  ;;  %v969_v2 = vmov (!%p167_p9), 0   ;;  %v203_v3 = vld [vmem:[%s1184_s3 + $0x10] sm:$0xff] (!%p167_p9)  ;;  %v202_v4 = vld [vmem:[%s1184_s3 + $0x8] sm:$0xff] (!%p167_p9) }
   0xe   : > { %170 = sbr.rel (%p167_p9) target bundleno = 632 (0x278), region = 36  ;;  %p193_p10 = scmp.lt.s32.totalorder (!%p167_p9), %s808_s27, 3  ;;  %306 = vmatprep.mubr.f32.mxu0 (!%p167_p9), %v968_v0  ;;  %553 = vmatprep.mubr.f32.mxu1 (!%p167_p9), %v968_v0  ;;  %v204_v5 = vld [vmem:[%s1184_s3 + $0x18] sm:$0xff] (!%p167_p9)  ;;  %v205_v8 = vld [vmem:[%s1182_s1] sm:$0xff] (!%p167_p9)  ;;  %vm229_vm0 = vcmask (!%p167_p9), 64512   ;;  %v206_v9 = vld [vmem:[%s1182_s1 + $0x8] sm:$0xff] (!%p167_p9) }
   0xf   : > { %882 = vset.pattern.permute.xlu0 (!%p167_p9), %v969_v2  ;;  %883 = vset.pattern.permute.xlu1 (!%p167_p9), %v969_v2  ;;  %v970_v10 = vmov (!%p167_p9), 1   ;;  %v207_v11 = vld [vmem:[%s1182_s1 + $0x10] sm:$0xff] (!%p167_p9)  ;;  %v971_v12 = vmov (!%p167_p9), 2   ;;  %v208_v13 = vld [vmem:[%s1182_s1 + $0x18] sm:$0xff] (!%p167_p9)  ;;  %v972_v14 = vmov (!%p167_p9), 3   ;;  %v973_v15 = vmov (!%p167_p9), 4  }
  0x10   : > { %211 = vperm.xlu0 (!%p167_p9), %882, %v201_v1   ;;  %221 = vperm.xlu1 (!%p167_p9), %883, %v203_v3   ;;  %v974_v16 = vmov (!%p167_p9), 5   ;;  %vm476_vm1 = vcmask (!%p167_p9), 261120   ;;  %s189_s14 = sand.u32 (!%p167_p9), 1, %s958_s16   ;;  %s975_s5 = smov (!%p167_p9), [#allocation2]  }
  0x11   : > { %s807_s20 = sshll.u32 (!%p167_p9), %s189_s14, 6  ;;  %s908_s6 = sshll.u32 (!%p167_p9), %s975_s5, 4  ;;  %s909_s6 = int_to_ptr.vmem [resolvable:$false] %s908_s6 }
  0x12   : > { %s1110_s22 = scalar_lea.vmem (!%p167_p9), [#allocation2], %s807_s20  ;;  %s910_s7 = scalar_lea.vmem (!%p167_p9), %s909_s6, 2048 }
  0x13   : > { %s741_s23 = sshll.u32 (!%p167_p9), %s1110_s22, 4  ;;  %s1120_s23 = int_to_ptr.vmem [resolvable:$true] %s741_s23 }
  0x14   : > { %216 = vperm.xlu0 (!%p167_p9), %882, %v202_v4   ;;  %226 = vperm.xlu1 (!%p167_p9), %883, %v204_v5   ;;  %s904_s30 = scalar_lea.vmem (!%p167_p9), %s1120_s23, 1024  ;;  %p911_p0 = scmp.lt.s32.totalorder (!%p167_p9), %s1120_s23, %s909_s6 }
  0x15   : > { %s1193_s27 = smov (!%p193_p10, %s808_s27), 3  ;;  %p905_p11 = scmp.ne.s32.totalorder %s1120_s23, %s904_s30 }
  0x16   : > { %s809_s10 = sshll.u32 %s1193_s27, 3  ;;  %p912_p1 = scmp.lt.s32.totalorder %s910_s7, %s904_s30 }
  0x17   : > { %s196_s13 = scalar_lea.vmem %s1181_s0, %s809_s10  ;;  %p906_p12 = pnand %p905_p11, %p1042_p5 }
  0x18   : > { %v200_v6 = vld [vmem:[%s196_s13 + $0x8] sm:$0xff]  ;;  %v199_v7 = vld [vmem:[%s196_s13] sm:$0xff]  ;;  %885 = vset.pattern.permute.xlu1 %v970_v10  ;;  %884 = vset.pattern.permute.xlu0 %v970_v10  ;;  %s818_s13 = sshll.u32 %s1025_s19, 8  ;;  %s1140_s19 = scalar_lea.sflag [#allocation3], %s189_s14 }
  0x19   : > { %242 = vmatprep.subr.mxu0 %v200_v6  ;;  %405 = vperm.xlu1 %885, %v202_v4   ;;  %s1118_s29 = scalar_lea.hbm %s1185_s4, %s818_s13  ;;  %p907_p13 = pneg %p906_p12 }
  0x1a   : > { %243 = vmatpush1.msra.mxu0 %v199_v7  ;;  %401 = vperm.xlu0 %884, %v201_v1   ;;  %p913_p2 = por %p912_p1, %p911_p0 }
  0x1b   : > { %810 = vmatmul.mubr.msk.f32.vlgmr.msra.gmra.mrb[0].mxu0 %vm229_vm0, %v205_v8 }
  0x1c   : > { %312 = vmatprep.mubr.f32.mxu0 %v968_v0  ;;  %p914_p3 = pnand %p913_p2, %p907_p13 }
  0x1d   : > { %886 = vset.pattern.permute.xlu1 %v971_v12 }
  0x1e   : > { %425 = vperm.xlu1 %886, %v201_v1   ;;  %887 = vset.pattern.permute.xlu0 %v971_v12 }
  0x1f   : > { %811 = vmatmul.mubr.msk.f32.gmra.mrb[2].mxu0 %vm229_vm0, %v206_v9  ;;  %429 = vperm.xlu0 %887, %v202_v4  }
  0x20   : > { %318 = vmatprep.mubr.f32.mxu0 %v968_v0 }
  0x22   : > { %888 = vset.pattern.permute.xlu1 %v970_v10 }
  0x23   : > { %812 = vmatmul.mubr.msk.f32.gmra.mrb[4].mxu0 %vm229_vm0, %v207_v11  ;;  %409 = vperm.xlu1 %888, %v203_v3  }
  0x24   : > { %324 = vmatprep.mubr.f32.mxu0 %v968_v0  ;;  %433 = vperm.xlu0 %887, %v203_v3  }
  0x27   : > { %813 = vmatmul.mubr.msk.f32.gmra.mrb[6].mxu0 %vm229_vm0, %v208_v13  ;;  %413 = vperm.xlu1 %888, %v204_v5  }
  0x28   : > { %890 = vset.pattern.permute.xlu0 %v972_v14 }
  0x29   : > { %461 = vperm.xlu0 %890, %v201_v1  }
  0x2b   : > { %889 = vset.pattern.permute.xlu1 %v971_v12 }
  0x2c   : > { %437 = vperm.xlu1 %889, %v204_v5  }
  0x2d   : > { %473 = vperm.xlu0 %890, %v204_v5  }
  0x30   : > { %891 = vset.pattern.permute.xlu1 %v972_v14 }
  0x31   : > { %465 = vperm.xlu1 %891, %v202_v4   ;;  %893 = vset.pattern.permute.xlu0 %v973_v15 }
  0x32   : > { %651 = vperm.xlu0 %893, %v202_v4  }
  0x35   : > { %469 = vperm.xlu1 %891, %v203_v3  }
  0x36   : > { %894 = vset.pattern.permute.xlu0 %v974_v16 }
  0x37   : > { %671 = vperm.xlu0 %894, %v201_v1  }
  0x39   : > { %892 = vset.pattern.permute.xlu1 %v973_v15 }
  0x3a   : > { %647 = vperm.xlu1 %892, %v201_v1  }
  0x3b   : > { %683 = vperm.xlu0 %894, %v204_v5  }
  0x3e   : > { %655 = vperm.xlu1 %892, %v203_v3  }
  0x42   : > { %659 = vperm.xlu1 %892, %v204_v5  }
  0x46   : > { %895 = vset.pattern.permute.xlu1 %v974_v16 }
  0x47   : > { %675 = vperm.xlu1 %895, %v202_v4  }
  0x4b   : > { %679 = vperm.xlu1 %895, %v203_v3  }
  0x8f   : > { %v212_v17 = vpop.permute.xlu0 %211  ;;  %v222_v26 = vpop.permute.xlu1 %221 }
  0x93   : > { %v217_v20 = vpop.permute.xlu0 %216  ;;  %v227_v35 = vpop.permute.xlu1 %226 }
  0xee   : > { %v308_v18 = vpop.f32.mrb[0].mxu0 }
  0xef   : > { %v310_v19 = vpop.f32.mrb[1].mxu0  ;;  %v309_v22 = vadd.f32 %v308_v18, %v212_v17 }
  0xf0   : > { %v311_v25 = vadd.f32 %v310_v19, %v212_v17 }
  0xf2   : > { %v314_v21 = vpop.f32.mrb[2].mxu0 }
  0xf3   : > { %v315_v23 = vadd.f32 %v314_v21, %v217_v20  ;;  %v316_v24 = vpop.f32.mrb[3].mxu0 }
  0xf4   : > { %v317_v27 = vadd.f32 %v316_v24, %v217_v20  ;;  %v406_v20 = vpop.permute.xlu1 %405 }
  0xf5   : > { %v331_v28 = vadd.f32 %v315_v23, %v309_v22 }
  0xf6   : > { %v340_v29 = vadd.f32 %v317_v27, %v311_v25  ;;  %v320_v30 = vpop.f32.mrb[4].mxu0 }
  0xf7   : > { %v321_v31 = vadd.f32 %v320_v30, %v222_v26  ;;  %v322_v32 = vpop.f32.mrb[5].mxu0 }
  0xf8   : > { %v323_v33 = vadd.f32 %v322_v32, %v222_v26 }
  0xf9   : > { %v332_v34 = vadd.f32 %v331_v28, %v321_v31  ;;  %v426_v28 = vpop.permute.xlu1 %425 }
  0xfa   : > { %v341_v36 = vadd.f32 %v340_v29, %v323_v33  ;;  %v326_v37 = vpop.f32.mrb[6].mxu0 }
  0xfb   : > { %v327_v38 = vadd.f32 %v326_v37, %v227_v35  ;;  %v328_v39 = vpop.f32.mrb[7].mxu0 }
  0xfc   : > { %v329_v40 = vadd.f32 %v328_v39, %v227_v35  ;;  %v402_v35 = vpop.permute.xlu0 %401 }
  0xfd   : > { %v333_v41 = vadd.f32 %v332_v34, %v327_v38  ;;  %v410_v34 = vpop.permute.xlu1 %409 }
  0xfe   : > { %v342_v42 = vadd.f32 %v341_v36, %v329_v40 }
  0xff   : > { %v334_v43 = vrot.slane %v333_v41, 4 }
 0x100   : > { %v343_v44 = vrot.slane %v342_v42, 4  ;;  %v430_v37 = vpop.permute.xlu0 %429 }
 0x101   : > { %v335_v45 = vadd.f32 %v334_v43, %v333_v41  ;;  %v414_v36 = vpop.permute.xlu1 %413 }
 0x102   : > { %v344_v46 = vadd.f32 %v343_v44, %v342_v42 }
 0x103   : > { %v336_v47 = vrot.slane %v335_v45, 2 }
 0x104   : > { %v345_v48 = vrot.slane %v344_v46, 2 }
 0x105   : > { %v337_v49 = vadd.f32 %v336_v47, %v335_v45 }
 0x106   : > { %v346_v50 = vadd.f32 %v345_v48, %v344_v46  ;;  %v438_v48 = vpop.permute.xlu1 %437 }
 0x107   : > { %v338_v51 = vrot.slane %v337_v49, 1 }
 0x108   : > { %v347_v52 = vrot.slane %v346_v50, 1 }
 0x109   : > { %v339_v53 = vadd.f32 %v338_v51, %v337_v49  ;;  %v434_v49 = vpop.permute.xlu0 %433 }
 0x10a   : > { %v348_v54 = vadd.f32 %v347_v52, %v346_v50 }
 0x10b   : > { %v350_v55 = vmul.f32 0.03125, %v339_v53 }
 0x10c   : > { %v351_v56 = vmul.f32 0.03125, %v348_v54 }
 0x10d   : > { %v356_v57 = vsub.f32 %v321_v31, %v350_v55  ;;  %v358_v58 = vsub.f32 %v327_v38, %v350_v55  ;;  %v352_v59 = vsub.f32 %v309_v22, %v350_v55  ;;  %v354_v60 = vsub.f32 %v315_v23, %v350_v55 }
 0x10e   : > { %v353_v61 = vsub.f32 %v311_v25, %v351_v56  ;;  %v357_v62 = vsub.f32 %v323_v33, %v351_v56  ;;  %v359_v63 = vsub.f32 %v329_v40, %v351_v56  ;;  %v355_v1 = vsub.f32 %v317_v27, %v351_v56 }
 0x10f   : > { %v360_v2 = vmul.f32 %v352_v59, %v352_v59  ;;  %v362_v3 = vmul.f32 %v354_v60, %v354_v60  ;;  %v364_v6 = vmul.f32 %v356_v57, %v356_v57  ;;  %v366_v10 = vmul.f32 %v358_v58, %v358_v58 }
 0x110   : > { %v361_v4 = vmul.f32 %v353_v61, %v353_v61  ;;  %v363_v5 = vmul.f32 %v355_v1, %v355_v1  ;;  %v365_v8 = vmul.f32 %v357_v62, %v357_v62  ;;  %v367_v12 = vmul.f32 %v359_v63, %v359_v63 }
 0x111   : > { %v368_v7 = vadd.f32 %v362_v3, %v360_v2 }
 0x112   : > { %v377_v9 = vadd.f32 %v363_v5, %v361_v4 }
 0x113   : > { %v369_v11 = vadd.f32 %v368_v7, %v364_v6 }
 0x114   : > { %v378_v13 = vadd.f32 %v377_v9, %v365_v8 }
 0x115   : > { %v370_v14 = vadd.f32 %v369_v11, %v366_v10 }
 0x116   : > { %v379_v15 = vadd.f32 %v378_v13, %v367_v12 }
 0x117   : > { %v371_v16 = vrot.slane %v370_v14, 4 }
 0x118   : > { %v380_v17 = vrot.slane %v379_v15, 4 }
 0x119   : > { %v372_v18 = vadd.f32 %v371_v16, %v370_v14  ;;  %v457_v16 = vld [vmem:[%s1183_s2 + $0x8] sm:$0xff] }
 0x11a   : > { %v381_v19 = vadd.f32 %v380_v17, %v379_v15  ;;  %v456_v15 = vld [vmem:[%s1183_s2] sm:$0xff]  ;;  %v458_v17 = vld [vmem:[%s1183_s2 + $0x10] sm:$0xff] }
 0x11b   : > { %v373_v21 = vrot.slane %v372_v18, 2 }
 0x11c   : > { %v382_v22 = vrot.slane %v381_v19, 2 }
 0x11d   : > { %v374_v23 = vadd.f32 %v373_v21, %v372_v18  ;;  %v459_v18 = vld [vmem:[%s1183_s2 + $0x18] sm:$0xff] }
 0x11e   : > { %v383_v24 = vadd.f32 %v382_v22, %v381_v19  ;;  %v462_v22 = vpop.permute.xlu0 %461 }
 0x11f   : > { %v375_v25 = vrot.slane %v374_v23, 1 }
 0x120   : > { %v384_v26 = vrot.slane %v383_v24, 1 }
 0x121   : > { %v376_v27 = vadd.f32 %v375_v25, %v374_v23 }
 0x122   : > { %v385_v29 = vadd.f32 %v384_v26, %v383_v24 }
 0x123   : > { %v386_v30 = vmul.f32 0.03125, %v376_v27 }
 0x124   : > { %v387_v31 = vmul.f32 0.03125, %v385_v29 }
 0x125   : > { %v388_v32 = vadd.f32 1e-05, %v386_v30 }
 0x126   : > { %v389_v33 = vadd.f32 1e-05, %v387_v31 }
 0x127   : > { %896 = vrsqrt.f32 %v388_v32 }
 0x128   : > { %898 = vrsqrt.f32 %v389_v33 }
 0x131   : > { %v897_v38 = vpop.eup %896 }
 0x132   : > { %v899_v39 = vpop.eup %898  ;;  %v394_v40 = vmul.f32 %v897_v38, %v354_v60  ;;  %v396_v41 = vmul.f32 %v897_v38, %v356_v57  ;;  %v392_v42 = vmul.f32 %v897_v38, %v352_v59  ;;  %v398_v43 = vmul.f32 %v897_v38, %v358_v58 }
 0x133   : > { %v395_v44 = vmul.f32 %v899_v39, %v355_v1  ;;  %v397_v45 = vmul.f32 %v899_v39, %v357_v62  ;;  %v393_v46 = vmul.f32 %v899_v39, %v353_v61  ;;  %v399_v47 = vmul.f32 %v899_v39, %v359_v63 }
 0x134   : > { %v418_v50 = vmul.f32 %v406_v20, %v394_v40  ;;  %v420_v51 = vmul.f32 %v410_v34, %v396_v41  ;;  %v416_v52 = vmul.f32 %v402_v35, %v392_v42  ;;  %v422_v53 = vmul.f32 %v414_v36, %v398_v43 }
 0x135   : > { %v419_v54 = vmul.f32 %v406_v20, %v395_v44  ;;  %v421_v55 = vmul.f32 %v410_v34, %v397_v45  ;;  %v417_v56 = vmul.f32 %v402_v35, %v393_v46  ;;  %v423_v2 = vmul.f32 %v414_v36, %v399_v47  ;;  %v466_v20 = vpop.permute.xlu1 %465  ;;  %v474_v36 = vpop.permute.xlu0 %473 }
 0x136   : > { %v440_v3 = vadd.f32 %v426_v28, %v416_v52  ;;  %v442_v4 = vadd.f32 %v430_v37, %v418_v50  ;;  %v446_v60 = vadd.f32 %v438_v48, %v422_v53  ;;  %v444_v57 = vadd.f32 %v434_v49, %v420_v51 }
 0x137   : > { %v443_v59 = vadd.f32 %v430_v37, %v419_v54  ;;  %v447_v58 = vadd.f32 %v438_v48, %v423_v2  ;;  %v445_v1 = vadd.f32 %v434_v49, %v421_v55  ;;  %v441_v62 = vadd.f32 %v426_v28, %v417_v56 }
 0x138   : > { %v450_v61 = vmax.f32 %v442_v4, 0.0  ;;  %v454_v63 = vmax.f32 %v446_v60, 0.0  ;;  %v452_v5 = vmax.f32 %v444_v57, 0.0  ;;  %v448_v6 = vmax.f32 %v440_v3, 0.0 }
 0x139   : > { %v455_v7 = vmax.f32 %v447_v58, 0.0  ;;  %v453_v8 = vmax.f32 %v445_v1, 0.0  ;;  %v449_v9 = vmax.f32 %v441_v62, 0.0  ;;  %v451_v10 = vmax.f32 %v443_v59, 0.0  ;;  %v470_v29 = vpop.permute.xlu1 %469 }
 0x13a   : > { %v827_v11 = vpack.c.bf16 %v450_v61, %v448_v6  ;;  %v831_v12 = vpack.c.bf16 %v454_v63, %v452_v5 }
 0x13b   : > { %v825_v13 = vpack.c.bf16 %v451_v10, %v449_v9  ;;  %v829_v14 = vpack.c.bf16 %v455_v7, %v453_v8 }
 0x13d   : > { %826 = vmatprep.subr.bf16.mxu1 %v825_v13 }
 0x13e   : > { %828 = vmatpush1.bf16.msra.mxu1 %v827_v11 }
 0x13f   : > { %830 = vmatprep.subr.bf16.mxu1 %v829_v14 }
 0x142   : > { %832 = vmatpush1.bf16.msra.mxu1 %v831_v12 }
 0x145   : > { %814 = vmatmul.mubr.msk.f32.vlgmr.msra.gmra.mrb[0].mxu1 %vm476_vm1, %v456_v15 }
 0x146   : > { %559 = vmatprep.mubr.f32.mxu1 %v968_v0 }
 0x149   : > { %815 = vmatmul.mubr.msk.f32.gmra.mrb[2].mxu1 %vm476_vm1, %v457_v16 }
 0x14a   : > { %565 = vmatprep.mubr.f32.mxu1 %v968_v0 }
 0x14d   : > { %816 = vmatmul.mubr.msk.f32.gmra.mrb[4].mxu1 %vm476_vm1, %v458_v17 }
 0x14e   : > { %571 = vmatprep.mubr.f32.mxu1 %v968_v0 }
 0x151   : > { %817 = vmatmul.mubr.msk.f32.gmra.mrb[6].mxu1 %vm476_vm1, %v459_v18 }
 0x218   : > { %v555_v19 = vpop.f32.mrb[0].mxu1 }
 0x219   : > { %v557_v21 = vpop.f32.mrb[1].mxu1  ;;  %v556_v24 = vadd.f32 %v555_v19, %v462_v22 }
 0x21a   : > { %v558_v27 = vadd.f32 %v557_v21, %v462_v22 }
 0x21c   : > { %v561_v23 = vpop.f32.mrb[2].mxu1 }
 0x21d   : > { %v562_v25 = vadd.f32 %v561_v23, %v466_v20  ;;  %v563_v26 = vpop.f32.mrb[3].mxu1 }
 0x21e   : > { %v564_v28 = vadd.f32 %v563_v26, %v466_v20 }
 0x21f   : > { %v578_v30 = vadd.f32 %v562_v25, %v556_v24 }
 0x220   : > { %v587_v31 = vadd.f32 %v564_v28, %v558_v27  ;;  %v567_v32 = vpop.f32.mrb[4].mxu1 }
 0x221   : > { %v568_v0 = vadd.f32 %v567_v32, %v470_v29  ;;  %v569_v33 = vpop.f32.mrb[5].mxu1 }
 0x222   : > { %v570_v34 = vadd.f32 %v569_v33, %v470_v29  ;;  %v703_v29 = vlaneseq }
 0x223   : > { %v579_v35 = vadd.f32 %v578_v30, %v568_v0 }
 0x224   : > { %v588_v37 = vadd.f32 %v587_v31, %v570_v34  ;;  %v573_v38 = vpop.f32.mrb[6].mxu1 }
 0x225   : > { %v574_v39 = vadd.f32 %v573_v38, %v474_v36  ;;  %v575_v40 = vpop.f32.mrb[7].mxu1  ;;  %v706_v38 = vstv %s818_s13 }
 0x226   : > { %v576_v41 = vadd.f32 %v575_v40, %v474_v36  ;;  %v652_v36 = vpop.permute.xlu0 %651 }
 0x227   : > { %v580_v42 = vadd.f32 %v579_v35, %v574_v39 }
 0x228   : > { %v589_v43 = vadd.f32 %v588_v37, %v576_v41 }
 0x229   : > { %v581_v44 = vrot.slane %v580_v42, 4 }
 0x22a   : > { %v590_v45 = vrot.slane %v589_v43, 4 }
 0x22b   : > { %v582_v46 = vadd.f32 %v581_v44, %v580_v42 }
 0x22c   : > { %v591_v47 = vadd.f32 %v590_v45, %v589_v43  ;;  %v672_v43 = vpop.permute.xlu0 %671 }
 0x22d   : > { %v583_v48 = vrot.slane %v582_v46, 2 }
 0x22e   : > { %v592_v49 = vrot.slane %v591_v47, 2 }
 0x22f   : > { %v584_v50 = vadd.f32 %v583_v48, %v582_v46 }
 0x230   : > { %v593_v51 = vadd.f32 %v592_v49, %v591_v47 }
 0x231   : > { %v585_v52 = vrot.slane %v584_v50, 1 }
 0x232   : > { %v594_v53 = vrot.slane %v593_v51, 1 }
 0x233   : > { %v586_v54 = vadd.f32 %v585_v52, %v584_v50 }
 0x234   : > { %v595_v55 = vadd.f32 %v594_v53, %v593_v51 }
 0x235   : > { %v596_v56 = vmul.f32 0.03125, %v586_v54 }
 0x236   : > { %v597_v2 = vmul.f32 0.03125, %v595_v55 }
 0x237   : > { %v600_v3 = vsub.f32 %v562_v25, %v596_v56  ;;  %v602_v4 = vsub.f32 %v568_v0, %v596_v56  ;;  %v604_v60 = vsub.f32 %v574_v39, %v596_v56  ;;  %v598_v57 = vsub.f32 %v556_v24, %v596_v56  ;;  %v648_v25 = vpop.permute.xlu1 %647 }
 0x238   : > { %v601_v59 = vsub.f32 %v564_v28, %v597_v2  ;;  %v603_v58 = vsub.f32 %v570_v34, %v597_v2  ;;  %v605_v1 = vsub.f32 %v576_v41, %v597_v2  ;;  %v599_v62 = vsub.f32 %v558_v27, %v597_v2 }
 0x239   : > { %v606_v61 = vmul.f32 %v598_v57, %v598_v57  ;;  %v608_v63 = vmul.f32 %v600_v3, %v600_v3  ;;  %v610_v7 = vmul.f32 %v602_v4, %v602_v4  ;;  %v612_v11 = vmul.f32 %v604_v60, %v604_v60 }
 0x23a   : > { %v607_v5 = vmul.f32 %v599_v62, %v599_v62  ;;  %v609_v6 = vmul.f32 %v601_v59, %v601_v59  ;;  %v611_v9 = vmul.f32 %v603_v58, %v603_v58  ;;  %v613_v13 = vmul.f32 %v605_v1, %v605_v1 }
 0x23b   : > { %v614_v8 = vadd.f32 %v608_v63, %v606_v61  ;;  %v656_v33 = vpop.permute.xlu1 %655  ;;  %v704_v34 = vand.u32 127, %v703_v29 }
 0x23c   : > { %v623_v10 = vadd.f32 %v609_v6, %v607_v5 }
 0x23d   : > { %v615_v12 = vadd.f32 %v614_v8, %v610_v7  ;;  %v705_v37 = vadd.s32 128, %v704_v34  ;;  %v707_v40 = vadd.s32 %v706_v38, %v704_v34  ;;  %v684_v8 = vpop.permute.xlu0 %683 }
 0x23e   : > { %v624_v14 = vadd.f32 %v623_v10, %v611_v9 }
 0x23f   : > { %v616_v15 = vadd.f32 %v615_v12, %v612_v11  ;;  %v660_v39 = vpop.permute.xlu1 %659  ;;  %v708_v41 = vadd.s32 %v706_v38, %v705_v37  ;;  %vm709_vm2 = vcmp.lt.s32.totalorder %v707_v40, 300 }
 0x240   : > { %v625_v16 = vadd.f32 %v624_v14, %v613_v13 }
 0x241   : > { %v617_v17 = vrot.slane %v616_v15, 4  ;;  %vm710_vm3 = vcmp.lt.s32.totalorder %v708_v41, 300 }
 0x242   : > { %v626_v18 = vrot.slane %v625_v16, 4 }
 0x243   : > { %v618_v19 = vadd.f32 %v617_v17, %v616_v15  ;;  %v676_v42 = vpop.permute.xlu1 %675 }
 0x244   : > { %v627_v20 = vadd.f32 %v626_v18, %v625_v16 }
 0x245   : > { %v619_v21 = vrot.slane %v618_v19, 2 }
 0x246   : > { %v628_v22 = vrot.slane %v627_v20, 2 }
 0x247   : > { %v620_v23 = vadd.f32 %v619_v21, %v618_v19  ;;  %v680_v7 = vpop.permute.xlu1 %679 }
 0x248   : > { %v629_v24 = vadd.f32 %v628_v22, %v627_v20 }
 0x249   : > { %v621_v26 = vrot.slane %v620_v23, 1 }
 0x24a   : > { %v630_v27 = vrot.slane %v629_v24, 1 }
 0x24b   : > { %v622_v28 = vadd.f32 %v621_v26, %v620_v23 }
 0x24c   : > { %v631_v30 = vadd.f32 %v630_v27, %v629_v24 }
 0x24d   : > { %v632_v31 = vmul.f32 0.03125, %v622_v28 }
 0x24e   : > { %v633_v32 = vmul.f32 0.03125, %v631_v30 }
 0x24f   : > { %v634_v0 = vadd.f32 1e-05, %v632_v31 }
 0x250   : > { %v635_v35 = vadd.f32 1e-05, %v633_v32 }
 0x251   : > { %900 = vrsqrt.f32 %v634_v0 }
 0x252   : > { %902 = vrsqrt.f32 %v635_v35 }
 0x25b   : > { %v901_v44 = vpop.eup %900 }
 0x25c   : > { %v903_v45 = vpop.eup %902  ;;  %v638_v46 = vmul.f32 %v901_v44, %v598_v57  ;;  %v642_v47 = vmul.f32 %v901_v44, %v602_v4  ;;  %v644_v48 = vmul.f32 %v901_v44, %v604_v60  ;;  %v640_v49 = vmul.f32 %v901_v44, %v600_v3 }
 0x25d   : > { %v639_v50 = vmul.f32 %v903_v45, %v599_v62  ;;  %v643_v51 = vmul.f32 %v903_v45, %v603_v58  ;;  %v645_v52 = vmul.f32 %v903_v45, %v605_v1  ;;  %v641_v53 = vmul.f32 %v903_v45, %v601_v59 }
 0x25e   : > { %v662_v54 = vmul.f32 %v648_v25, %v638_v46  ;;  %v666_v55 = vmul.f32 %v656_v33, %v642_v47  ;;  %v668_v56 = vmul.f32 %v660_v39, %v644_v48  ;;  %v664_v2 = vmul.f32 %v652_v36, %v640_v49 }
 0x25f   : > { %v663_v61 = vmul.f32 %v648_v25, %v639_v50  ;;  %v667_v63 = vmul.f32 %v656_v33, %v643_v51  ;;  %v669_v5 = vmul.f32 %v660_v39, %v645_v52  ;;  %v665_v6 = vmul.f32 %v652_v36, %v641_v53 }
 0x260   : > { %v688_v9 = vadd.f32 %v676_v42, %v664_v2  ;;  %v686_v3 = vadd.f32 %v672_v43, %v662_v54  ;;  %v690_v4 = vadd.f32 %v680_v7, %v666_v55  ;;  %v692_v60 = vadd.f32 %v684_v8, %v668_v56 }
 0x261   : > { %v689_v57 = vadd.f32 %v676_v42, %v665_v6  ;;  %v687_v59 = vadd.f32 %v672_v43, %v663_v61  ;;  %v691_v58 = vadd.f32 %v680_v7, %v667_v63  ;;  %v693_v1 = vadd.f32 %v684_v8, %v669_v5 }
 0x262   : > { %v696_v62 = vmax.f32 %v688_v9, 0.0  ;;  %v694_v10 = vmax.f32 %v686_v3, 0.0  ;;  %v698_v11 = vmax.f32 %v690_v4, 0.0  ;;  %v700_v12 = vmax.f32 %v692_v60, 0.0 }
 0x263   : > { %v697_v13 = vmax.f32 %v689_v57, 0.0  ;;  %v695_v14 = vmax.f32 %v687_v59, 0.0  ;;  %v699_v15 = vmax.f32 %v691_v58, 0.0  ;;  %v701_v16 = vmax.f32 %v693_v1, 0.0 }
 0x264   : > { %v713_v17 = vsel %vm709_vm2, %v696_v62, 0.0  ;;  %v711_v18 = vsel %vm709_vm2, %v694_v10, 0.0  ;;  %v715_v19 = vsel %vm709_vm2, %v698_v11, 0.0  ;;  %v717_v20 = vsel %vm709_vm2, %v700_v12, 0.0 }
 0x265   : > { %v714_v21 = vsel %vm710_vm3, %v697_v13, 0.0  ;;  %721 = vst [vmem:[%s1110_s22 + $0x10] sm:$0xff] %v713_v17  ;;  %v712_v22 = vsel %vm710_vm3, %v695_v14, 0.0  ;;  %719 = vst [vmem:[%s1110_s22] sm:$0xff] %v711_v18  ;;  %v716_v23 = vsel %vm710_vm3, %v699_v15, 0.0  ;;  %v718_v24 = vsel %vm710_vm3, %v701_v16, 0.0 }
 0x266   : > { %723 = vst [vmem:[%s1110_s22 + $0x20] sm:$0xff] %v715_v19  ;;  %725 = vst [vmem:[%s1110_s22 + $0x30] sm:$0xff] %v717_v20 }
 0x267   : > { %722 = vst [vmem:[%s1110_s22 + $0x18] sm:$0xff] %v714_v21  ;;  %720 = vst [vmem:[%s1110_s22 + $0x8] sm:$0xff] %v712_v22 }
 0x268   : > { %724 = vst [vmem:[%s1110_s22 + $0x28] sm:$0xff] %v716_v23  ;;  %726 = vst [vmem:[%s1110_s22 + $0x38] sm:$0xff] %v718_v24 }
 0x269   : > { %917 = shalt.err (!%p914_p3)
}
 0x26a   : > { %s918_s8 = scalar_lea.hbm %s1118_s29, 1024  ;;  %s922_s11 = scalar_lea.hbm %s1185_s4, 2048 }
 0x26b   : > { %p919_p4 = scmp.ne.s32.totalorder %s1118_s29, %s918_s8  ;;  %p923_p9 = scmp.lt.u32.totalorder %s1118_s29, %s1185_s4 }
 0x26c   : > { %p924_p10 = scmp.lt.u32.totalorder %s922_s11, %s918_s8  ;;  %p926_p12 = scmp.lt.u32.totalorder %s918_s8, %s1118_s29 }
 0x26d   : > { %p920_p7 = pnand %p919_p4, %p1042_p5 }
 0x26e   : > { %p925_p11 = por %p924_p10, %p923_p9 }
 0x26f   : > { %p921_p8 = pneg %p920_p7 }
 0x270   : > { %p927_p13 = por %p926_p12, %p925_p11 }
 0x272   : > { %p928_p0 = pnand %p927_p13, %p921_p8 }
 0x274   : > { %931 = shalt.err (!%p928_p0)
}
 0x275   : > { %s976_s14 = smov 256   ;;  %s977_s20 = smov 512  }
 0x276   : > { %s978_s22 = smov 16  }
 0x277   : > { %833 = dma.vmem_to_hbm [thread:$0]  (%p1042_p5), %s1120_s23, 1024, %s1118_s29, %s1140_s19, %s976_s14, %s977_s20, %s978_s22  }
 0x278 PF: > { %p839_p1 = scmp.ge.s32.totalorder %s966_s18, 2  ;;  %s756_s27 = sand.u32 1, %s954_s15  }
 0x279   : > { %s757_s28 = scalar_lea.sflag [#allocation3], %s756_s27 }
 0x27a   : > { %p836_p2 = pnand %p839_p1, %p1046_p6 }
 0x27c   : > { %949 = dma.done.wait (!%p836_p2), %s757_s28, 1024  }
 0x27d   : > { %951 = vsyncadd (!%p836_p2), %s757_s28, 4294966272  ;;  %p14_p3 = scmp.ge.s32.totalorder %s1029_s21, 4   ;;  %s1188_s15 = smov %s958_s16 }
 0x27e   : > { %s1189_s16 = smov %s962_s17  ;;  %s1190_s17 = smov %s1040_s24 }
 0x27f   : > { %s1191_s18 = smov %s1029_s21  ;;  %16 = sbr.rel (!%p14_p3) target bundleno = 3 (0x3), region = 71 }
 0x286   :  { %762 = vsyncpa [#allocation3], 1 }
 0x287   :  { %764 = vsyncpa [#allocation3 + $0x1], 1 }

</bundles_post_ra>
